<compile_context>
chip_gen: v6e
topology: v6e:2x2x1
jax: 0.10.0
libtpu: 0.0.40
codegen_flags: <defaults>
</compile_context>

<pallas_src>
import functools

import jax
import jax.numpy as jnp
import numpy as np
from jax.experimental import pallas as pl
from jax.experimental.pallas import tpu as pltpu


# Mantissa field of the smallest f32 whose significand 1.m >= sqrt(2):
# round(log2(1.m * 2^e)) == e if m < _SQRT2_MANT else e + 1.
_SQRT2_MANT = 0x3504F4
# Fused ap2 rounding constants: add carries mantissa->exponent exactly when
# mant >= _SQRT2_MANT; mask keeps sign+exponent and clears the mantissa.
_AP2_ROUND = (1 << 23) - _SQRT2_MANT          # 0x004AFB0C
_AP2_MASK = 0xFF800000

# VMEM sizing / parallelism knobs.
_VMEM_BUDGET_BYTES = 28 << 20    # target live footprint (blocks + temporaries)
_VMEM_LIMIT_BYTES = 48 << 20     # <= 64 MiB physical per-TC on v7x; ample on v5e/v6e
_TARGET_CHANNEL_BLOCKS = 4       # >=2 keeps both v7x TensorCores busy; 4 helps pipelining


def _ap2(x):
    """sign(x) * 2^round(log2(|x|)) via f32 exponent-field bit math (2 VALU ops).

    ap2(+-0) == +-0 falls out naturally.  Non-finite inputs are not mapped
    identically to the PyTorch log2 reference (NaN -> +-Inf here); BN
    statistics of finite inputs never produce them.
    """
    bits = pltpu.bitcast(x.astype(jnp.float32), jnp.uint32)
    out = (bits + jnp.uint32(_AP2_ROUND)) & jnp.uint32(_AP2_MASK)
    return pltpu.bitcast(out, jnp.float32)


def _qbn_kernel(x_ref, rm_ref, rv_ref, w_ref, b_ref,
                y_ref, nrm_ref, nrv_ref, *, momentum, eps, inv_count):
    # x block: (N, TC, HW) -- channels on the sublane axis, H*W on lanes.
    x = x_ref[...].astype(jnp.float32)

    # --- running-mean update (quantized); (TC, 1) ---
    new_mean = jnp.sum(jnp.sum(x, axis=0), axis=-1, keepdims=True) * inv_count
    rm = _ap2((1.0 - momentum) * rm_ref[...] + momentum * new_mean)

    # --- center + quantize ((TC,1) broadcasts across (N,TC,HW)) ---
    ctr = _ap2(x - rm)

    # --- running-var update (quantized), computed on centered+quantized input ---
    new_var = jnp.sum(jnp.sum(ctr * ctr, axis=0), axis=-1, keepdims=True) * inv_count
    rv = _ap2((1.0 - momentum) * rv_ref[...] + momentum * new_var)

    # --- folded normalize + affine ---
    # std_q, ctr and ap2(w) are all exact powers of two, so folding the scale
    # into one per-channel factor is bit-identical to
    #   ap2( ap2(w) * ap2(ctr / std_q) + ap2(b) )
    # while removing one full-tensor multiply.
    std_q = _ap2(jnp.sqrt(rv + eps))             # (TC, 1), exact power of two
    scale_q = _ap2(w_ref[...]) * (1.0 / std_q)   # (TC, 1), exact power of two (or 0)
    b_q = _ap2(b_ref[...])                       # (TC, 1)
    y = _ap2(scale_q * ctr + b_q)

    y_ref[...] = y.astype(y_ref.dtype)
    nrm_ref[...] = rm
    nrv_ref[...] = rv


def _cdiv(a, b):
    return -(-a // b)


def _round_up(v, m):
    return _cdiv(v, m) * m


def _pick_channel_block(C, N, HW, in_itemsize, out_itemsize):
    """Channel-block size: VMEM-budgeted, dtype-aware sublane multiple, and
    split into >= _TARGET_CHANNEL_BLOCKS blocks when possible (v7x megacore)."""
    # Dtype-aware sublane tile: 8 for 4-byte, 16 for 2-byte, 32 for 1-byte.
    sub = 32 // min(in_itemsize, out_itemsize, 4)

    # Live VMEM per channel row of one block:
    #   2x double-buffered input (native dtype) + 2x double-buffered output
    #   + ~3 f32 full-block temporaries (upcast x, ctr, pre-downcast y).
    per_ch = N * HW * (2 * in_itemsize + 2 * out_itemsize + 3 * 4)

    if C <= sub:
        if per_ch * C > _VMEM_BUDGET_BYTES:
            # TODO(synk): reduction-tiled fallback (inner "arbitrary" H*W axis
            # with per-channel VMEM accumulators) for very large N*H*W.
            raise ValueError(
                "quantized_batch_norm: per-channel data is too large for a "
                f"single-pass VMEM-resident block ({per_ch * C} B needed, "
                f"{_VMEM_BUDGET_BYTES} B budget); reduction-tiled fallback is "
                "not implemented.")
        return C

    tc_fit = _VMEM_BUDGET_BYTES // per_ch
    if tc_fit < sub:
        # TODO(synk): same reduction-tiled fallback as above.
        raise ValueError(
            f"quantized_batch_norm: even the minimum {sub}-channel block "
            f"({per_ch * sub} B) exceeds the {_VMEM_BUDGET_BYTES} B VMEM "
            "budget; reduction-tiled fallback is not implemented.")
    tc_fit = (tc_fit // sub) * sub

    # Split into >= _TARGET_CHANNEL_BLOCKS channel blocks when C permits, so
    # the 'parallel' grid axis can be sharded across v7x's two TensorCores.
    tc_par = max(sub, _round_up(_cdiv(C, _TARGET_CHANNEL_BLOCKS), sub))
    return min(tc_fit, tc_par)


def quantized_batch_norm(x_nchw, running_mean, running_var, weight, bias,
                         *, momentum=0.125, eps=1e-5, out_dtype=None):
    """Training-mode forward. Returns (y, new_running_mean, new_running_var).

    out_dtype=None keeps the input dtype (module semantics); jnp.bfloat16 is a
    lossless option (every output is +-2^k) that halves writeback traffic.
    """
    N, C, H, W = x_nchw.shape
    HW = H * W
    out_dtype = np.dtype(x_nchw.dtype if out_dtype is None else out_dtype)

    # Free, contiguous reshape -- no transpose / extra HBM pass.
    # Lane axis = H*W; when H*W is not a multiple of 128 (e.g. 7x7 maps) stores
    # run at reduced lane utilization.
    # TODO(synk): pad/retile H*W to a 128 multiple (with masked statistics) for
    # small-feature-map layers.
    x = x_nchw.reshape(N, C, HW)
    rm = running_mean.reshape(C, 1).astype(jnp.float32)
    rv = running_var.reshape(C, 1).astype(jnp.float32)
    w = weight.reshape(C, 1).astype(jnp.float32)
    b = bias.reshape(C, 1).astype(jnp.float32)

    tc = _pick_channel_block(C, N, HW, x.dtype.itemsize, out_dtype.itemsize)
    grid = (pl.cdiv(C, tc),)

    kernel = functools.partial(_qbn_kernel, momentum=momentum, eps=eps,
                               inv_count=1.0 / (N * HW))

    x_spec = pl.BlockSpec((N, tc, HW), lambda c: (0, c, 0))
    p_spec = pl.BlockSpec((tc, 1), lambda c: (c, 0))

    y, new_rm, new_rv = pl.pallas_call(
        kernel,
        grid=grid,
        in_specs=[x_spec, p_spec, p_spec, p_spec, p_spec],
        out_specs=(x_spec, p_spec, p_spec),
        out_shape=(
            jax.ShapeDtypeStruct((N, C, HW), out_dtype),
            jax.ShapeDtypeStruct((C, 1), jnp.float32),
            jax.ShapeDtypeStruct((C, 1), jnp.float32),
        ),
        compiler_params=pltpu.CompilerParams(
            dimension_semantics=("parallel",),
            vmem_limit_bytes=_VMEM_LIMIT_BYTES),
    )(x, rm, rv, w, b)

    return y.reshape(N, C, H, W), new_rm.reshape(C), new_rv.reshape(C)


# ----------------------------- numpy reference -----------------------------

def _ap2_np(v):
    v = np.ascontiguousarray(np.asarray(v, np.float32))
    bits = v.view(np.uint32)
    out = (bits + np.uint32(_AP2_ROUND)) & np.uint32(_AP2_MASK)
    return out.view(np.float32)


def _reference_numpy(x, rm0, rv0, w, b, *, momentum, eps):
    """Unfused reference (ap2(ctr/std) then affine), mirroring the PyTorch code."""
    x = np.asarray(x, np.float32)
    N, C, H, W = x.shape
    inv_count = np.float32(1.0 / (N * H * W))
    m = np.float32(momentum)

    xr = np.transpose(x, (1, 0, 2, 3)).reshape(C, -1)
    new_mean = xr.sum(axis=1, dtype=np.float32) * inv_count
    rm = _ap2_np((1 - m) * np.asarray(rm0, np.float32) + m * new_mean)

    ctr = _ap2_np(x - rm.reshape(1, C, 1, 1))

    cr = np.transpose(ctr, (1, 0, 2, 3)).reshape(C, -1)
    new_var = (cr * cr).sum(axis=1, dtype=np.float32) * inv_count
    rv = _ap2_np((1 - m) * np.asarray(rv0, np.float32) + m * new_var)

    std_q = _ap2_np(np.sqrt(rv + np.float32(eps)))
    xn = _ap2_np(ctr / std_q.reshape(1, C, 1, 1))
    w_q = _ap2_np(np.asarray(w, np.float32)).reshape(1, C, 1, 1)
    b_q = _ap2_np(np.asarray(b, np.float32)).reshape(1, C, 1, 1)
    y = _ap2_np(w_q * xn + b_q)
    return y, rm, rv


if __name__ == "__main__":
    key = jax.random.PRNGKey(0)
    k_x, k_w = jax.random.split(key)

    N, C, H, W = 2, 4, 16, 16
    x = jax.random.normal(k_x, (N, C, H, W), dtype=jnp.float32)

    # deterministic parameter init matching reset_parameters():
    #   weight ~ U(0,1) - 0.5, bias = 0, running mean = 0, running var = 1
    weight = jax.random.uniform(k_w, (C,), dtype=jnp.float32) - 0.5
    bias = jnp.zeros((C,), dtype=jnp.float32)
    running_mean = jnp.zeros((C,), dtype=jnp.float32)
    running_var = jnp.ones((C,), dtype=jnp.float32)

    # TODO(synk): ApproxPow2 straight-through backward not implemented (forward only).
    y, new_mean, new_var = quantized_batch_norm(
        x, running_mean, running_var, weight, bias, momentum=0.125, eps=1e-5)
    jax.block_until_ready((y, new_mean, new_var))

    assert y.shape == (N, C, H, W) and y.dtype == x.dtype
    assert new_mean.shape == (C,) and new_var.shape == (C,)
    assert bool(jnp.all(jnp.isfinite(y)))
    assert bool(jnp.all(new_var > 0.0))
    # every nonzero output must be +-2^k (mantissa field of |y| is zero)
    mant = jax.lax.bitcast_convert_type(y, jnp.uint32) & jnp.uint32(0x007FFFFF)
    assert bool(jnp.all(jnp.where(y != 0.0, mant == 0, True)))

    # unfused numpy reference (validates pipeline + affine folding + ap2)
    y_ref, rm_ref, rv_ref = _reference_numpy(
        x, running_mean, running_var, weight, bias, momentum=0.125, eps=1e-5)
    assert np.array_equal(np.asarray(y, np.float32), y_ref)
    assert np.array_equal(np.asarray(new_mean, np.float32), rm_ref)
    assert np.array_equal(np.asarray(new_var, np.float32), rv_ref)

    # lossless bf16 writeback option (perf path for bandwidth-bound chips)
    y_bf16, _, _ = quantized_batch_norm(
        x, running_mean, running_var, weight, bias,
        momentum=0.125, eps=1e-5, out_dtype=jnp.bfloat16)
    jax.block_until_ready(y_bf16)
    assert y_bf16.dtype == jnp.bfloat16
    assert bool(jnp.all(y_bf16.astype(jnp.float32) == y))

    print("KERNEL_OK")
</pallas_src>

<mosaic_0001>
module attributes {stable_mosaic.version = 11 : i64} {
  func.func @_qbn_kernel(%arg0: i32, %arg1: memref<2x4x256xf32, #tpu.memory_space<vmem>>, %arg2: memref<4x1xf32, #tpu.memory_space<vmem>>, %arg3: memref<4x1xf32, #tpu.memory_space<vmem>>, %arg4: memref<4x1xf32, #tpu.memory_space<vmem>>, %arg5: memref<4x1xf32, #tpu.memory_space<vmem>>, %arg6: memref<2x4x256xf32, #tpu.memory_space<vmem>>, %arg7: memref<4x1xf32, #tpu.memory_space<vmem>>, %arg8: memref<4x1xf32, #tpu.memory_space<vmem>>) attributes {dimension_semantics = [#tpu.dimension_semantics<parallel>], iteration_bounds = array<i64: 1>, scalar_prefetch = 0 : i64, scratch_operands = 0 : i64, tpu.core_type = #tpu.core_type<tc>, window_params = [{transform_indices = @transform_0, window_bounds = array<i64: 2, 4, 256>}, {transform_indices = @transform_1, window_bounds = array<i64: 4, 1>}, {transform_indices = @transform_2, window_bounds = array<i64: 4, 1>}, {transform_indices = @transform_3, window_bounds = array<i64: 4, 1>}, {transform_indices = @transform_4, window_bounds = array<i64: 4, 1>}, {transform_indices = @transform_5, window_bounds = array<i64: 2, 4, 256>}, {transform_indices = @transform_6, window_bounds = array<i64: 4, 1>}, {transform_indices = @transform_7, window_bounds = array<i64: 4, 1>}]} {
    %c0 = arith.constant 0 : index
    %c0_0 = arith.constant 0 : index
    %c0_1 = arith.constant 0 : index
    %0 = vector.load %arg1[%c0, %c0_0, %c0_1] : memref<2x4x256xf32, #tpu.memory_space<vmem>>, vector<2x4x256xf32>
    %cst = arith.constant dense<0.000000e+00> : vector<4x256xf32>
    %1 = vector.multi_reduction <add>, %0, %cst [0] : vector<2x4x256xf32> to vector<4x256xf32>
    %cst_2 = arith.constant dense<0.000000e+00> : vector<4xf32>
    %2 = vector.multi_reduction <add>, %1, %cst_2 [1] : vector<4x256xf32> to vector<4xf32>
    %3 = vector.shape_cast %2 : vector<4xf32> to vector<4x1xf32>
    %cst_3 = arith.constant 0.001953125 : f32
    %4 = vector.broadcast %cst_3 : f32 to vector<4x1xf32>
    %5 = arith.mulf %3, %4 : vector<4x1xf32>
    %c0_4 = arith.constant 0 : index
    %c0_5 = arith.constant 0 : index
    %6 = vector.load %arg2[%c0_4, %c0_5] : memref<4x1xf32, #tpu.memory_space<vmem>>, vector<4x1xf32>
    %cst_6 = arith.constant 8.750000e-01 : f32
    %7 = vector.broadcast %cst_6 : f32 to vector<4x1xf32>
    %8 = arith.mulf %7, %6 : vector<4x1xf32>
    %cst_7 = arith.constant 1.250000e-01 : f32
    %9 = vector.broadcast %cst_7 : f32 to vector<4x1xf32>
    %10 = arith.mulf %9, %5 : vector<4x1xf32>
    %11 = arith.addf %8, %10 : vector<4x1xf32>
    %12 = tpu.bitcast %11 : vector<4x1xf32> -> vector<4x1xi32>
    %c4913932_i32 = arith.constant 4913932 : i32
    %13 = vector.broadcast %c4913932_i32 : i32 to vector<4x1xi32>
    %14 = arith.addi %12, %13 : vector<4x1xi32>
    %c-8388608_i32 = arith.constant -8388608 : i32
    %15 = vector.broadcast %c-8388608_i32 : i32 to vector<4x1xi32>
    %16 = arith.andi %14, %15 : vector<4x1xi32>
    %17 = tpu.bitcast %16 : vector<4x1xi32> -> vector<4x1xf32>
    %18 = vector.shape_cast %17 : vector<4x1xf32> to vector<1x4x1xf32>
    %19 = vector.broadcast %18 : vector<1x4x1xf32> to vector<2x4x256xf32>
    %20 = arith.subf %0, %19 : vector<2x4x256xf32>
    %21 = tpu.bitcast %20 : vector<2x4x256xf32> -> vector<2x4x256xi32>
    %c4913932_i32_8 = arith.constant 4913932 : i32
    %22 = vector.broadcast %c4913932_i32_8 : i32 to vector<2x4x256xi32>
    %23 = arith.addi %21, %22 : vector<2x4x256xi32>
    %c-8388608_i32_9 = arith.constant -8388608 : i32
    %24 = vector.broadcast %c-8388608_i32_9 : i32 to vector<2x4x256xi32>
    %25 = arith.andi %23, %24 : vector<2x4x256xi32>
    %26 = tpu.bitcast %25 : vector<2x4x256xi32> -> vector<2x4x256xf32>
    %27 = arith.mulf %26, %26 : vector<2x4x256xf32>
    %cst_10 = arith.constant dense<0.000000e+00> : vector<4x256xf32>
    %28 = vector.multi_reduction <add>, %27, %cst_10 [0] : vector<2x4x256xf32> to vector<4x256xf32>
    %cst_11 = arith.constant dense<0.000000e+00> : vector<4xf32>
    %29 = vector.multi_reduction <add>, %28, %cst_11 [1] : vector<4x256xf32> to vector<4xf32>
    %30 = vector.shape_cast %29 : vector<4xf32> to vector<4x1xf32>
    %cst_12 = arith.constant 0.001953125 : f32
    %31 = vector.broadcast %cst_12 : f32 to vector<4x1xf32>
    %32 = arith.mulf %30, %31 : vector<4x1xf32>
    %c0_13 = arith.constant 0 : index
    %c0_14 = arith.constant 0 : index
    %33 = vector.load %arg3[%c0_13, %c0_14] : memref<4x1xf32, #tpu.memory_space<vmem>>, vector<4x1xf32>
    %cst_15 = arith.constant 8.750000e-01 : f32
    %34 = vector.broadcast %cst_15 : f32 to vector<4x1xf32>
    %35 = arith.mulf %34, %33 : vector<4x1xf32>
    %cst_16 = arith.constant 1.250000e-01 : f32
    %36 = vector.broadcast %cst_16 : f32 to vector<4x1xf32>
    %37 = arith.mulf %36, %32 : vector<4x1xf32>
    %38 = arith.addf %35, %37 : vector<4x1xf32>
    %39 = tpu.bitcast %38 : vector<4x1xf32> -> vector<4x1xi32>
    %c4913932_i32_17 = arith.constant 4913932 : i32
    %40 = vector.broadcast %c4913932_i32_17 : i32 to vector<4x1xi32>
    %41 = arith.addi %39, %40 : vector<4x1xi32>
    %c-8388608_i32_18 = arith.constant -8388608 : i32
    %42 = vector.broadcast %c-8388608_i32_18 : i32 to vector<4x1xi32>
    %43 = arith.andi %41, %42 : vector<4x1xi32>
    %44 = tpu.bitcast %43 : vector<4x1xi32> -> vector<4x1xf32>
    %cst_19 = arith.constant 9.99999974E-6 : f32
    %45 = vector.broadcast %cst_19 : f32 to vector<4x1xf32>
    %46 = arith.addf %44, %45 : vector<4x1xf32>
    %47 = math.sqrt %46 : vector<4x1xf32>
    %48 = tpu.bitcast %47 : vector<4x1xf32> -> vector<4x1xi32>
    %c4913932_i32_20 = arith.constant 4913932 : i32
    %49 = vector.broadcast %c4913932_i32_20 : i32 to vector<4x1xi32>
    %50 = arith.addi %48, %49 : vector<4x1xi32>
    %c-8388608_i32_21 = arith.constant -8388608 : i32
    %51 = vector.broadcast %c-8388608_i32_21 : i32 to vector<4x1xi32>
    %52 = arith.andi %50, %51 : vector<4x1xi32>
    %53 = tpu.bitcast %52 : vector<4x1xi32> -> vector<4x1xf32>
    %c0_22 = arith.constant 0 : index
    %c0_23 = arith.constant 0 : index
    %54 = vector.load %arg4[%c0_22, %c0_23] : memref<4x1xf32, #tpu.memory_space<vmem>>, vector<4x1xf32>
    %55 = tpu.bitcast %54 : vector<4x1xf32> -> vector<4x1xi32>
    %c4913932_i32_24 = arith.constant 4913932 : i32
    %56 = vector.broadcast %c4913932_i32_24 : i32 to vector<4x1xi32>
    %57 = arith.addi %55, %56 : vector<4x1xi32>
    %c-8388608_i32_25 = arith.constant -8388608 : i32
    %58 = vector.broadcast %c-8388608_i32_25 : i32 to vector<4x1xi32>
    %59 = arith.andi %57, %58 : vector<4x1xi32>
    %60 = tpu.bitcast %59 : vector<4x1xi32> -> vector<4x1xf32>
    %cst_26 = arith.constant 1.000000e+00 : f32
    %61 = vector.broadcast %cst_26 : f32 to vector<4x1xf32>
    %62 = arith.divf %61, %53 : vector<4x1xf32>
    %63 = arith.mulf %60, %62 : vector<4x1xf32>
    %c0_27 = arith.constant 0 : index
    %c0_28 = arith.constant 0 : index
    %64 = vector.load %arg5[%c0_27, %c0_28] : memref<4x1xf32, #tpu.memory_space<vmem>>, vector<4x1xf32>
    %65 = tpu.bitcast %64 : vector<4x1xf32> -> vector<4x1xi32>
    %c4913932_i32_29 = arith.constant 4913932 : i32
    %66 = vector.broadcast %c4913932_i32_29 : i32 to vector<4x1xi32>
    %67 = arith.addi %65, %66 : vector<4x1xi32>
    %c-8388608_i32_30 = arith.constant -8388608 : i32
    %68 = vector.broadcast %c-8388608_i32_30 : i32 to vector<4x1xi32>
    %69 = arith.andi %67, %68 : vector<4x1xi32>
    %70 = tpu.bitcast %69 : vector<4x1xi32> -> vector<4x1xf32>
    %71 = vector.shape_cast %63 : vector<4x1xf32> to vector<1x4x1xf32>
    %72 = vector.broadcast %71 : vector<1x4x1xf32> to vector<2x4x256xf32>
    %73 = arith.mulf %72, %26 : vector<2x4x256xf32>
    %74 = vector.shape_cast %70 : vector<4x1xf32> to vector<1x4x1xf32>
    %75 = vector.broadcast %74 : vector<1x4x1xf32> to vector<2x4x256xf32>
    %76 = arith.addf %73, %75 : vector<2x4x256xf32>
    %77 = tpu.bitcast %76 : vector<2x4x256xf32> -> vector<2x4x256xi32>
    %c4913932_i32_31 = arith.constant 4913932 : i32
    %78 = vector.broadcast %c4913932_i32_31 : i32 to vector<2x4x256xi32>
    %79 = arith.addi %77, %78 : vector<2x4x256xi32>
    %c-8388608_i32_32 = arith.constant -8388608 : i32
    %80 = vector.broadcast %c-8388608_i32_32 : i32 to vector<2x4x256xi32>
    %81 = arith.andi %79, %80 : vector<2x4x256xi32>
    %82 = tpu.bitcast %81 : vector<2x4x256xi32> -> vector<2x4x256xf32>
    %c0_33 = arith.constant 0 : index
    %c0_34 = arith.constant 0 : index
    %c0_35 = arith.constant 0 : index
    %83 = vector.load %arg6[%c0_33, %c0_34, %c0_35] : memref<2x4x256xf32, #tpu.memory_space<vmem>>, vector<2x4x256xf32>
    tpu.vector_store %arg6[%c0_33, %c0_34, %c0_35], %82 {strides = array<i32>} : memref<2x4x256xf32, #tpu.memory_space<vmem>>, vector<2x4x256xf32>,
    %c0_36 = arith.constant 0 : index
    %c0_37 = arith.constant 0 : index
    %84 = vector.load %arg7[%c0_36, %c0_37] : memref<4x1xf32, #tpu.memory_space<vmem>>, vector<4x1xf32>
    tpu.vector_store %arg7[%c0_36, %c0_37], %17 {strides = array<i32>} : memref<4x1xf32, #tpu.memory_space<vmem>>, vector<4x1xf32>,
    %c0_38 = arith.constant 0 : index
    %c0_39 = arith.constant 0 : index
    %85 = vector.load %arg8[%c0_38, %c0_39] : memref<4x1xf32, #tpu.memory_space<vmem>>, vector<4x1xf32>
    tpu.vector_store %arg8[%c0_38, %c0_39], %44 {strides = array<i32>} : memref<4x1xf32, #tpu.memory_space<vmem>>, vector<4x1xf32>,
    return
  }
  func.func @transform_0(%arg0: i32) -> (i32, i32, i32) {
    %c0_i32 = arith.constant 0 : i32
    %c0_i32_0 = arith.constant 0 : i32
    %c0_i32_1 = arith.constant 0 : i32
    return %c0_i32, %arg0, %c0_i32_0 : i32, i32, i32
  }
  func.func @transform_1(%arg0: i32) -> (i32, i32) {
    %c0_i32 = arith.constant 0 : i32
    %c0_i32_0 = arith.constant 0 : i32
    return %arg0, %c0_i32 : i32, i32
  }
  func.func @transform_2(%arg0: i32) -> (i32, i32) {
    %c0_i32 = arith.constant 0 : i32
    %c0_i32_0 = arith.constant 0 : i32
    return %arg0, %c0_i32 : i32, i32
  }
  func.func @transform_3(%arg0: i32) -> (i32, i32) {
    %c0_i32 = arith.constant 0 : i32
    %c0_i32_0 = arith.constant 0 : i32
    return %arg0, %c0_i32 : i32, i32
  }
  func.func @transform_4(%arg0: i32) -> (i32, i32) {
    %c0_i32 = arith.constant 0 : i32
    %c0_i32_0 = arith.constant 0 : i32
    return %arg0, %c0_i32 : i32, i32
  }
  func.func @transform_5(%arg0: i32) -> (i32, i32, i32) {
    %c0_i32 = arith.constant 0 : i32
    %c0_i32_0 = arith.constant 0 : i32
    %c0_i32_1 = arith.constant 0 : i32
    return %c0_i32, %arg0, %c0_i32_0 : i32, i32, i32
  }
  func.func @transform_6(%arg0: i32) -> (i32, i32) {
    %c0_i32 = arith.constant 0 : i32
    %c0_i32_0 = arith.constant 0 : i32
    return %arg0, %c0_i32 : i32, i32
  }
  func.func @transform_7(%arg0: i32) -> (i32, i32) {
    %c0_i32 = arith.constant 0 : i32
    %c0_i32_0 = arith.constant 0 : i32
    return %arg0, %c0_i32 : i32, i32
  }
}

</mosaic_0001>

<bundles_post_ra>
// kernel: tpu_custom_call.1
= control target key start
LH: loop header
LB: loop body
LE: loop exit
PB: predicated region body
PF: predicated region fallthrough
CT: control target
= control target key end

     0   :  { %vm32_vm0 = vcmask 1043456   ;;  %s313_s0 = inlined_call_operand.vmem [shape: f32[2,4,256], index: 0, kind: input, shape index: {}]   ;;  %s314_s1 = inlined_call_operand.vmem [shape: f32[4,1], index: 1, kind: input, shape index: {}]   ;;  %s315_s2 = inlined_call_operand.vmem [shape: f32[4,1], index: 2, kind: input, shape index: {}]   ;;  %s316_s3 = inlined_call_operand.vmem [shape: f32[4,1], index: 3, kind: input, shape index: {}]   ;;  %s317_s4 = inlined_call_operand.vmem [shape: f32[4,1], index: 4, kind: input, shape index: {}]   ;;  %s318_s5 = inlined_call_operand.hbm [shape: f32[2,4,256], index: 5, kind: output, shape index: {0}]   ;;  %s319_s6 = inlined_call_operand.vmem [shape: f32[4,1], index: 6, kind: output, shape index: {1}]   ;;  %s320_s7 = inlined_call_operand.vmem [shape: f32[4,1], index: 7, kind: output, shape index: {2}]  }
   0x1   :  { %v24_v0 = vld [vmem:[%s313_s0] sm:$0xff]  ;;  %v25_v1 = vld [vmem:[%s313_s0 + $0x8] sm:$0xff] }
   0x2   :  { %v28_v2 = vcombine.high %v24_v0, %v24_v0  ;;  %v29_v3 = vcombine.high %v25_v1, %v25_v1  ;;  %v33_v4 = vsel %vm32_vm0, %v24_v0, 0.0  ;;  %v34_v5 = vsel %vm32_vm0, %v25_v1, 0.0 }
   0x3   :  { %13 = vsyncpa [#allocation3], 0  ;;  %v35_v6 = vadd.f32 %v34_v5, %v33_v4  ;;  %v227_v13 = vmov 0   ;;  %v45_v14 = vld [vmem:[%s314_s1] sm:$0xf]  ;;  %vm165_vm1 = vcmask 3072   ;;  %v59_v24 = vlaneseq }
   0x4   :  { %v36_v7 = vsel %vm32_vm0, %v28_v2, 0.0  ;;  %v37_v8 = vsel %vm32_vm0, %v29_v3, 0.0  ;;  %197 = vset.pattern.permute.xlu0 %v227_v13  ;;  %198 = vset.pattern.permute.xlu1 %v227_v13  ;;  %v46_v16 = vmul.f32 0.875, %v45_v14  ;;  %v228_v22 = vmov 839922192  }
   0x5   :  { %v38_v9 = vadd.f32 %v37_v8, %v36_v7  ;;  %v39_v10 = vsel %vm32_vm0, %v35_v6, 0.0  ;;  %v57_v23 = vunpack.c.l.s4 %v228_v22  ;;  %v60_v26 = vshrl.u32 %v59_v24, 7  ;;  %v98_v55 = vld [vmem:[%s315_s2] sm:$0xf] }
   0x6   :  { %v99_v57 = vmul.f32 0.875, %v98_v55  ;;  %v118_v7 = vld [vmem:[%s316_s3] sm:$0xf]  ;;  %s229_s3 = smov [#allocation2]  }
   0x7   :  { %v40_v11 = vsel %vm32_vm0, %v38_v9, 0.0  ;;  %v58_v25 = vunpack.c.0.s8 %v57_v23  ;;  %v120_v8 = vadd.s32 4913932, %v118_v7  ;;  %v126_v9 = vld [vmem:[%s317_s4] sm:$0xf]  ;;  %s173_s4 = sshll.u32 %s229_s3, 4  ;;  %s174_s4 = int_to_ptr.vmem [resolvable:$true] %s173_s4 }
   0x8   :  { %v41_v12 = vadd.f32 %v40_v11, %v39_v10  ;;  %v128_v11 = vadd.s32 4913932, %v126_v9  ;;  %p210_p1 = scmp.lt.s32.totalorder %s174_s4, %s174_s4 }
   0x9   :  { %v61_v27 = vsub.s32 %v58_v25, %v60_v26  ;;  %v121_v10 = vand.u32 4286578688, %v120_v8 }
   0xa   :  { %42 = vadd.xlane.f32.xlu0 %v41_v12  ;;  %v129_v14 = vand.u32 4286578688, %v128_v11 }
  0x93   :  { %v43_v15 = vpop.xlane.xlu0 %42 }
  0x94   :  { %v44_v17 = vmul.f32 0.001953125, %v43_v15 }
  0x96   :  { %v47_v18 = vmul.f32 0.125, %v44_v17 }
  0x98   :  { %v48_v19 = vadd.f32 %v47_v18, %v46_v16 }
  0x9a   :  { %v50_v20 = vadd.s32 4913932, %v48_v19 }
  0x9c   :  { %v51_v21 = vand.u32 4286578688, %v50_v20 }
  0x9e   :  { %54 = vperm.xlu0 %197, %v51_v21   ;;  %166 = vst.msk [vmem:[%s319_s6] sm:$0xf] %vm165_vm1, %v51_v21 }
 0x119   :  { %v55_v28 = vpop.permute.xlu0 %54 }
 0x11a   :  { %v62_v29 = vrot.slane %v55_v28, %v61_v27 }
 0x11c   :  { %v64_v30 = vsub.f32 %v24_v0, %v62_v29  ;;  %v65_v31 = vsub.f32 %v25_v1, %v62_v29 }
 0x11e   :  { %v68_v32 = vcombine.high %v64_v30, %v64_v30  ;;  %v69_v33 = vcombine.high %v65_v31, %v65_v31  ;;  %v70_v34 = vadd.s32 4913932, %v64_v30  ;;  %v72_v35 = vadd.s32 4913932, %v65_v31 }
 0x120   :  { %v71_v36 = vadd.s32 4913932, %v68_v32  ;;  %v73_v37 = vadd.s32 4913932, %v69_v33  ;;  %v74_v38 = vand.u32 4286578688, %v70_v34  ;;  %v76_v39 = vand.u32 4286578688, %v72_v35 }
 0x122   :  { %v75_v40 = vand.u32 4286578688, %v71_v36  ;;  %v77_v41 = vand.u32 4286578688, %v73_v37  ;;  %v82_v42 = vmul.f32 %v74_v38, %v74_v38  ;;  %v84_v43 = vmul.f32 %v76_v39, %v76_v39 }
 0x124   :  { %v83_v44 = vmul.f32 %v75_v40, %v75_v40  ;;  %v85_v45 = vmul.f32 %v77_v41, %v77_v41  ;;  %v86_v46 = vsel %vm32_vm0, %v82_v42, 0.0  ;;  %v87_v47 = vsel %vm32_vm0, %v84_v43, 0.0 }
 0x125   :  { %v88_v48 = vadd.f32 %v87_v47, %v86_v46 }
 0x126   :  { %v89_v49 = vsel %vm32_vm0, %v83_v44, 0.0  ;;  %v90_v50 = vsel %vm32_vm0, %v85_v45, 0.0 }
 0x127   :  { %v91_v51 = vadd.f32 %v90_v50, %v89_v49  ;;  %v92_v52 = vsel %vm32_vm0, %v88_v48, 0.0 }
 0x129   :  { %v93_v53 = vsel %vm32_vm0, %v91_v51, 0.0 }
 0x12a   :  { %v94_v54 = vadd.f32 %v93_v53, %v92_v52 }
 0x12c   :  { %95 = vadd.xlane.f32.xlu1 %v94_v54 }
 0x1b5   :  { %v96_v56 = vpop.xlane.xlu1 %95 }
 0x1b6   :  { %v97_v58 = vmul.f32 0.001953125, %v96_v56 }
 0x1b8   :  { %v100_v59 = vmul.f32 0.125, %v97_v58 }
 0x1ba   :  { %v101_v60 = vadd.f32 %v100_v59, %v99_v57 }
 0x1bc   :  { %v103_v61 = vadd.s32 4913932, %v101_v60 }
 0x1be   :  { %v104_v62 = vand.u32 4286578688, %v103_v61 }
 0x1c0   :  { %v106_v63 = vadd.f32 1e-05, %v104_v62  ;;  %167 = vst.msk [vmem:[%s320_s7] sm:$0xf] %vm165_vm1, %v104_v62  ;;  %s205_s7 = scalar_lea.vmem %s174_s4, 256 }
 0x1c1   :  { %p206_p0 = scmp.ne.s32.totalorder %s174_s4, %s205_s7  ;;  %p211_p2 = scmp.lt.s32.totalorder %s205_s7, %s205_s7 }
 0x1c2   :  { %201 = vrsqrt.f32 %v106_v63  ;;  %vm109_vm2 = vcmp.eq.f32.partialorder %v106_v63, inf  ;;  %v112_v2 = vand.u32 2147483648, %v106_v63  ;;  %vm111_vm3 = vcmp.eq.f32.partialorder %v106_v63, 0.0 }
 0x1c3   :  { %p212_p3 = por %p211_p2, %p210_p1 }
 0x1c5   :  { %p213_p4 = pnand %p212_p3, %p206_p0 }
 0x1cf   :  { %v202_v0 = vpop.eup %201 }
 0x1d0   :  { %v108_v1 = vmul.f32 %v202_v0, %v106_v63 }
 0x1d2   :  { %v110_v3 = vsel %vm109_vm2, %v106_v63, %v108_v1 }
 0x1d3   :  { %v113_v4 = vsel %vm111_vm3, %v112_v2, %v110_v3 }
 0x1d4   :  { %v115_v5 = vadd.s32 4913932, %v113_v4 }
 0x1d6   :  { %v116_v6 = vand.u32 4286578688, %v115_v5 }
 0x1d8   :  { %203 = vrcp.f32 %v116_v6 }
 0x1e5   :  { %v204_v12 = vpop.eup %203 }
 0x1e6   :  { %v125_v13 = vmul.f32 %v204_v12, %v121_v10 }
 0x1e8   :  { %132 = vperm.xlu1 %198, %v125_v13  }
 0x1ec   :  { %140 = vperm.xlu1 %198, %v129_v14  }
 0x263   :  { %v133_v15 = vpop.permute.xlu1 %132 }
 0x264   :  { %v135_v16 = vmul.f32 %v133_v15, %v74_v38  ;;  %v136_v17 = vmul.f32 %v133_v15, %v75_v40  ;;  %v137_v18 = vmul.f32 %v133_v15, %v76_v39  ;;  %v138_v19 = vmul.f32 %v133_v15, %v77_v41 }
 0x267   :  { %v141_v20 = vpop.permute.xlu1 %140 }
 0x268   :  { %v143_v21 = vadd.f32 %v141_v20, %v135_v16  ;;  %v144_v22 = vadd.f32 %v141_v20, %v136_v17  ;;  %v145_v23 = vadd.f32 %v141_v20, %v137_v18  ;;  %v146_v24 = vadd.f32 %v141_v20, %v138_v19 }
 0x26a   :  { %v151_v25 = vadd.s32 4913932, %v143_v21  ;;  %v152_v26 = vadd.s32 4913932, %v144_v22  ;;  %v153_v27 = vadd.s32 4913932, %v145_v23 }
 0x26b   :  { %v154_v28 = vadd.s32 4913932, %v146_v24 }
 0x26c   :  { %v155_v29 = vand.u32 4286578688, %v151_v25  ;;  %v156_v30 = vand.u32 4286578688, %v152_v26  ;;  %v157_v31 = vand.u32 4286578688, %v153_v27 }
 0x26d   :  { %v158_v32 = vand.u32 4286578688, %v154_v28 }
 0x26e   :  { %v159_v33 = vcombine.low %v155_v29, %v156_v30 }
 0x26f   :  { %v160_v34 = vcombine.low %v157_v31, %v158_v32 }
 0x270   :  { %163 = vst [vmem:[#allocation2] sm:$0xff] %v159_v33 }
 0x271   :  { %164 = vst [vmem:[#allocation2 + $0x8] sm:$0xff] %v160_v34 }
 0x272   :  { %216 = shalt.err (!%p213_p4)
}
 0x273   :  { %s230_s13 = smov 128   ;;  %s231_s14 = smov 8  }
 0x274   :  { %179 = dma.vmem_to_hbm [thread:$0]  %s174_s4, 256, %s318_s5, [#allocation3], %s230_s13, %s230_s13, %s231_s14  }
 0x275   :  { %225 = dma.done.wait [#allocation3], 256  }
 0x276   :  { %226 = vsyncadd [#allocation3], 4294967040 }
 0x277   :  { %191 = vsyncpa [#allocation3], 1 }

</bundles_post_ra>
